<compile_context>
chip_gen: v6e
topology: v6e:2x2x1
jax: 0.10.0
libtpu: 0.0.40
codegen_flags: <defaults>
</compile_context>

<pallas_src>
import functools

import jax
import jax.numpy as jnp
from jax import lax
from jax.experimental import pallas as pl
from jax.experimental.pallas import tpu as pltpu

LANE = 128
SUB = 8                   # sublane tile height
MAX_BLOCK_ROWS = 1024     # per-input block: 1024x128xf32 = 512 KiB (x2 inputs x2 bufs = 2 MiB)
STRIP_ROWS = 256          # inner strip height (keeps temporaries ~32 vregs each)


def _round_up(x, m):
    return ((x + m - 1) // m) * m


def _focal_kernel(pred_ref, true_ref, out_ref, *,
                  gamma, alpha, hard_labels,
                  block_rows, strip_rows,
                  blocks_per_core, num_blocks,
                  last_block_valid, last_block_full, needs_oob_guard):
    c = pl.program_id(0)          # core-split axis ("parallel")
    i = pl.program_id(1)          # block axis ("arbitrary", reduction)
    gb = c * blocks_per_core + i  # global block index

    @pl.when(i == 0)
    def _():
        out_ref[...] = jnp.zeros_like(out_ref)

    two_am1 = 2.0 * float(alpha) - 1.0   # folded at trace time
    one_ma = 1.0 - float(alpha)

    def strip_loss(start, size, masked):
        x = pred_ref[pl.ds(start, size), :].astype(jnp.float32)
        y = true_ref[pl.ds(start, size), :].astype(jnp.float32)

        x_relu = jnp.maximum(x, 0.0)
        e = jnp.exp(-jnp.abs(x))                     # EUP
        one_plus_e = 1.0 + e
        bce = x_relu - x * y + jnp.log(one_plus_e)   # stable BCE-with-logits

        # p_t = exp(-bce) = exp(x*y - max(x,0)) / (1 + exp(-|x|))   (exact identity)
        if hard_labels:
            # exact for y in {0,1}: exp(x*y - max(x,0)) == where(x*(2y-1) < 0, e, 1)
            num = jnp.where(x * (y + y - 1.0) < 0.0, e, 1.0)
        else:
            num = jnp.exp(x * y - x_relu)
        p_t = num * pl.reciprocal(one_plus_e, approx=True)

        alpha_factor = y * two_am1 + one_ma
        one_m_pt = 1.0 - p_t
        g = float(gamma)
        if g == 2.0:
            mod = one_m_pt * one_m_pt
        elif g.is_integer() and g >= 0.0:
            mod = jnp.ones_like(one_m_pt)
            for _ in range(int(g)):
                mod = mod * one_m_pt
        else:
            # clamp guards pow-NaN when p_t rounds a few ulps above 1
            mod = jnp.maximum(one_m_pt, 0.0) ** g

        loss = bce * alpha_factor * mod

        if masked:
            row = lax.broadcasted_iota(jnp.int32, (size, LANE), 0)
            lane = lax.broadcasted_iota(jnp.int32, (size, LANE), 1)
            flat = (start + row) * LANE + lane      # block-local flat element index
            loss = jnp.where(flat < last_block_valid, loss, 0.0)

        # Reduce only over the sublane-tile axis (pure VPU adds) -> (8, 128) partial.
        return loss.reshape(size // SUB, SUB, LANE).sum(axis=0)

    def accum(masked):
        n_full = block_rows // strip_rows
        tail = block_rows - n_full * strip_rows
        if n_full == 1 and tail == 0:
            out_ref[0] += strip_loss(0, strip_rows, masked)
            return

        def body(s, carry):
            start = pl.multiple_of(s * strip_rows, strip_rows)
            out_ref[0] += strip_loss(start, strip_rows, masked)
            return carry

        lax.fori_loop(0, n_full, body, 0, unroll=True)
        if tail:
            out_ref[0] += strip_loss(n_full * strip_rows, tail, masked)

    if last_block_full and not needs_oob_guard:
        accum(False)
    elif last_block_full:
        @pl.when(gb < num_blocks)
        def _():
            accum(False)
    else:
        if num_blocks > 1:
            @pl.when(gb < num_blocks - 1)
            def _():
                accum(False)

        @pl.when(gb == num_blocks - 1)
        def _():
            accum(True)
        # gb >= num_blocks (uneven core split): skipped entirely, contributes 0.


def focal_loss_seg(pred, true, gamma=2.0, alpha=0.25, hard_labels=False,
                   max_block_rows=MAX_BLOCK_ROWS, strip_rows=STRIP_ROWS, num_cores=2):
    """Focal loss (mean reduction) over BCE-with-logits. pred = logits; true in [0,1].

    Set hard_labels=True only when targets are exactly {0,1} (saves one EUP exp/elem).
    Inputs may be any float dtype (bf16 targets/logits stream half the HBM bytes).
    """
    # TODO(synk): reduction='sum'/'none' variants of loss_fcn.reduction not exposed;
    # default nn.BCEWithLogitsLoss() reduction is 'mean', which is what this implements.
    assert pred.shape == true.shape
    n_valid = int(pred.size)
    assert n_valid > 0

    rows = pl.cdiv(n_valid, LANE)
    lane_pad = rows * LANE - n_valid

    flat_p = pred.reshape(-1)
    flat_t = true.reshape(-1)
    if lane_pad:
        # TODO(synk): ragged tail still costs one HBM copy; only hit when
        # pred.size is not a multiple of 128. Padded elements are masked in-kernel.
        flat_p = jnp.pad(flat_p, (0, lane_pad))
        flat_t = jnp.pad(flat_t, (0, lane_pad))
    p2 = flat_p.reshape(rows, LANE)
    t2 = flat_t.reshape(rows, LANE)

    rows8 = _round_up(rows, SUB)
    max_block_rows = max(SUB, (int(max_block_rows) // SUB) * SUB)
    block_rows = rows8 if rows8 <= max_block_rows else max_block_rows
    strip = min(max(SUB, (int(strip_rows) // SUB) * SUB), block_rows)

    num_blocks = pl.cdiv(rows, block_rows)
    num_cores = int(num_cores) if num_blocks >= 2 else 1
    blocks_per_core = pl.cdiv(num_blocks, num_cores)
    needs_oob_guard = (num_cores * blocks_per_core != num_blocks)

    last_block_valid = n_valid - (num_blocks - 1) * block_rows * LANE
    last_block_full = (last_block_valid == block_rows * LANE)

    kernel = functools.partial(
        _focal_kernel,
        gamma=float(gamma), alpha=float(alpha), hard_labels=bool(hard_labels),
        block_rows=int(block_rows), strip_rows=int(strip),
        blocks_per_core=int(blocks_per_core), num_blocks=int(num_blocks),
        last_block_valid=int(last_block_valid),
        last_block_full=bool(last_block_full),
        needs_oob_guard=bool(needs_oob_guard),
    )

    bpc = int(blocks_per_core)
    nb = int(num_blocks)

    def in_map(c, i):
        # Clamp so an uneven core split never issues an out-of-range block DMA;
        # the duplicated block's contribution is skipped in-kernel via pl.when.
        return (jnp.minimum(c * bpc + i, nb - 1), 0)

    partials = pl.pallas_call(
        kernel,
        out_shape=jax.ShapeDtypeStruct((num_cores, SUB, LANE), jnp.float32),
        grid_spec=pltpu.PrefetchScalarGridSpec(
            num_scalar_prefetch=0,
            grid=(num_cores, blocks_per_core),
            in_specs=[
                pl.BlockSpec((block_rows, LANE), in_map),
                pl.BlockSpec((block_rows, LANE), in_map),
            ],
            out_specs=pl.BlockSpec((1, SUB, LANE), lambda c, i: (c, 0, 0)),
        ),
        compiler_params=pltpu.CompilerParams(
            dimension_semantics=("parallel", "arbitrary"),
        ),
    )(p2, t2)

    # Final cross-lane reduction + mean scale in the wrapper (tiny, off the kernel).
    return jnp.sum(partials) * (1.0 / n_valid)


def _reference(pred, true, gamma=2.0, alpha=0.25):
    x = pred.astype(jnp.float32)
    y = true.astype(jnp.float32)
    bce = jnp.maximum(x, 0.0) - x * y + jnp.log1p(jnp.exp(-jnp.abs(x)))
    p_t = jnp.exp(-bce)
    af = y * alpha + (1.0 - y) * (1.0 - alpha)
    mf = (1.0 - p_t) ** gamma
    return jnp.mean(bce * af * mf)


if __name__ == "__main__":
    key = jax.random.PRNGKey(0)
    k1, k2 = jax.random.split(key)
    # NCHW: batch=2, channels=4, spatial=16x16
    pred = jax.random.normal(k1, (2, 4, 16, 16), dtype=jnp.float32) * 2.0
    true = (jax.random.uniform(k2, (2, 4, 16, 16)) > 0.5).astype(jnp.float32)

    out = jax.block_until_ready(focal_loss_seg(pred, true, gamma=2.0, alpha=0.25))
    ref = _reference(pred, true)
    assert jnp.allclose(out, ref, rtol=2e-3, atol=1e-6), (out, ref)

    # Ragged size (not a multiple of 128), multi-block + partial last block,
    # dual-core split path, bf16 targets, hard-label fast path, inner strip loop.
    k3, k4 = jax.random.split(k1)
    pred2 = jax.random.normal(k3, (3, 5, 17, 19), dtype=jnp.float32)
    true2 = (jax.random.uniform(k4, (3, 5, 17, 19)) > 0.5).astype(jnp.float32)
    out2 = jax.block_until_ready(
        focal_loss_seg(pred2, true2.astype(jnp.bfloat16), hard_labels=True,
                       max_block_rows=16, strip_rows=8))
    ref2 = _reference(pred2, true2)
    assert jnp.allclose(out2, ref2, rtol=2e-3, atol=1e-6), (out2, ref2)

    print("KERNEL_OK")
</pallas_src>

<mosaic_0001>
module attributes {stable_mosaic.version = 11 : i64} {
  func.func @_focal_kernel(%arg0: i32, %arg1: i32, %arg2: memref<16x128xf32, #tpu.memory_space<vmem>>, %arg3: memref<16x128xf32, #tpu.memory_space<vmem>>, %arg4: memref<1x8x128xf32, #tpu.memory_space<vmem>>) attributes {dimension_semantics = [#tpu.dimension_semantics<parallel>, #tpu.dimension_semantics<arbitrary>], iteration_bounds = array<i64: 1, 1>, scalar_prefetch = 0 : i64, scratch_operands = 0 : i64, tpu.core_type = #tpu.core_type<tc>, window_params = [{transform_indices = @transform_0, window_bounds = array<i64: 16, 128>}, {transform_indices = @transform_1, window_bounds = array<i64: 16, 128>}, {transform_indices = @transform_2, window_bounds = array<i64: 1, 8, 128>}]} {
    %c0_i32 = arith.constant 0 : i32
    %0 = arith.cmpi eq, %arg1, %c0_i32 : i32
    %1 = arith.extui %0 : i1 to i32
    %c0_i32_0 = arith.constant 0 : i32
    %2 = arith.cmpi ne, %1, %c0_i32_0 : i32
    scf.if %2 {
      %cst_16 = arith.constant 0.000000e+00 : f32
      %39 = vector.broadcast %cst_16 : f32 to vector<1x8x128xf32>
      %c0_17 = arith.constant 0 : index
      %c0_18 = arith.constant 0 : index
      %c0_19 = arith.constant 0 : index
      %40 = vector.load %arg4[%c0_17, %c0_18, %c0_19] : memref<1x8x128xf32, #tpu.memory_space<vmem>>, vector<1x8x128xf32>
      tpu.vector_store %arg4[%c0_17, %c0_18, %c0_19], %39 {strides = array<i32>} : memref<1x8x128xf32, #tpu.memory_space<vmem>>, vector<1x8x128xf32>,
    } else {
    }
    %c0 = arith.constant 0 : index
    %c0_1 = arith.constant 0 : index
    %c0_2 = arith.constant 0 : index
    %3 = vector.load %arg4[%c0, %c0_1, %c0_2] : memref<1x8x128xf32, #tpu.memory_space<vmem>>, vector<1x8x128xf32>
    %4 = vector.shape_cast %3 : vector<1x8x128xf32> to vector<8x128xf32>
    %c0_3 = arith.constant 0 : index
    %c0_4 = arith.constant 0 : index
    %5 = vector.load %arg2[%c0_3, %c0_4] : memref<16x128xf32, #tpu.memory_space<vmem>>, vector<16x128xf32>
    %c0_5 = arith.constant 0 : index
    %c0_6 = arith.constant 0 : index
    %6 = vector.load %arg3[%c0_5, %c0_6] : memref<16x128xf32, #tpu.memory_space<vmem>>, vector<16x128xf32>
    %cst = arith.constant 0.000000e+00 : f32
    %7 = vector.broadcast %cst : f32 to vector<16x128xf32>
    %8 = arith.maximumf %5, %7 : vector<16x128xf32>
    %9 = math.absf %5 : vector<16x128xf32>
    %cst_7 = arith.constant 0.000000e+00 : f32
    %10 = vector.broadcast %cst_7 : f32 to vector<16x128xf32>
    %11 = arith.subf %10, %9 : vector<16x128xf32>
    %12 = math.exp %11 : vector<16x128xf32>
    %cst_8 = arith.constant 1.000000e+00 : f32
    %13 = vector.broadcast %cst_8 : f32 to vector<16x128xf32>
    %14 = arith.addf %13, %12 : vector<16x128xf32>
    %15 = arith.mulf %5, %6 : vector<16x128xf32>
    %16 = arith.subf %8, %15 : vector<16x128xf32>
    %17 = math.log %14 : vector<16x128xf32>
    %18 = arith.addf %16, %17 : vector<16x128xf32>
    %19 = arith.mulf %5, %6 : vector<16x128xf32>
    %20 = arith.subf %19, %8 : vector<16x128xf32>
    %21 = math.exp %20 : vector<16x128xf32>
    %22 = tpu.reciprocal %14 {approx = true} : vector<16x128xf32> -> vector<16x128xf32>
    %23 = arith.mulf %21, %22 : vector<16x128xf32>
    %cst_9 = arith.constant -5.000000e-01 : f32
    %24 = vector.broadcast %cst_9 : f32 to vector<16x128xf32>
    %25 = arith.mulf %6, %24 : vector<16x128xf32>
    %cst_10 = arith.constant 7.500000e-01 : f32
    %26 = vector.broadcast %cst_10 : f32 to vector<16x128xf32>
    %27 = arith.addf %25, %26 : vector<16x128xf32>
    %cst_11 = arith.constant 1.000000e+00 : f32
    %28 = vector.broadcast %cst_11 : f32 to vector<16x128xf32>
    %29 = arith.subf %28, %23 : vector<16x128xf32>
    %30 = arith.mulf %29, %29 : vector<16x128xf32>
    %31 = arith.mulf %18, %27 : vector<16x128xf32>
    %32 = arith.mulf %31, %30 : vector<16x128xf32>
    %33 = vector.shape_cast %32 : vector<16x128xf32> to vector<2x8x128xf32>
    %cst_12 = arith.constant dense<0.000000e+00> : vector<8x128xf32>
    %34 = vector.multi_reduction <add>, %33, %cst_12 [0] : vector<2x8x128xf32> to vector<8x128xf32>
    %35 = arith.addf %4, %34 : vector<8x128xf32>
    %c0_13 = arith.constant 0 : index
    %c0_14 = arith.constant 0 : index
    %c0_15 = arith.constant 0 : index
    %36 = vector.load %arg4[%c0_13, %c0_14, %c0_15] : memref<1x8x128xf32, #tpu.memory_space<vmem>>, vector<1x8x128xf32>
    %37 = vector.shape_cast %36 : vector<1x8x128xf32> to vector<8x128xf32>
    %38 = vector.shape_cast %35 : vector<8x128xf32> to vector<1x8x128xf32>
    tpu.vector_store %arg4[%c0_13, %c0_14, %c0_15], %38 {strides = array<i32>} : memref<1x8x128xf32, #tpu.memory_space<vmem>>, vector<1x8x128xf32>,
    return
  }
  func.func @transform_0(%arg0: i32, %arg1: i32) -> (i32, i32) {
    %c1_i32 = arith.constant 1 : i32
    %0 = arith.muli %arg0, %c1_i32 : i32
    %1 = arith.addi %0, %arg1 : i32
    %c0_i32 = arith.constant 0 : i32
    %2 = arith.minsi %1, %c0_i32 : i32
    %c0_i32_0 = arith.constant 0 : i32
    %c0_i32_1 = arith.constant 0 : i32
    return %2, %c0_i32_0 : i32, i32
  }
  func.func @transform_1(%arg0: i32, %arg1: i32) -> (i32, i32) {
    %c1_i32 = arith.constant 1 : i32
    %0 = arith.muli %arg0, %c1_i32 : i32
    %1 = arith.addi %0, %arg1 : i32
    %c0_i32 = arith.constant 0 : i32
    %2 = arith.minsi %1, %c0_i32 : i32
    %c0_i32_0 = arith.constant 0 : i32
    %c0_i32_1 = arith.constant 0 : i32
    return %2, %c0_i32_0 : i32, i32
  }
  func.func @transform_2(%arg0: i32, %arg1: i32) -> (i32, i32, i32) {
    %c0_i32 = arith.constant 0 : i32
    %c0_i32_0 = arith.constant 0 : i32
    %c0_i32_1 = arith.constant 0 : i32
    return %arg0, %c0_i32, %c0_i32_0 : i32, i32, i32
  }
}

</mosaic_0001>

<bundles_post_ra>
// kernel: tpu_custom_call.1
= control target key start
LH: loop header
LB: loop body
LE: loop exit
PB: predicated region body
PF: predicated region fallthrough
CT: control target
= control target key end

     0   :  { %7 = vsyncpa [#allocation3], 0  ;;  %s254_s0 = inlined_call_operand.hbm [shape: f32[16,128], index: 0, kind: input, shape index: {}]   ;;  %s255_s1 = inlined_call_operand.hbm [shape: f32[16,128], index: 1, kind: input, shape index: {}]   ;;  %s256_s2 = inlined_call_operand.hbm [shape: f32[1,8,128], index: 2, kind: output, shape index: {}]  }
   0x1   :  { %8 = vsyncpa [#allocation6], 0 }
   0x2   :  { %9 = vsyncpa [#allocation4], 0  ;;  %s225_s9 = smov [#allocation2]  }
   0x3   :  { %s21_s10 = sshll.u32 %s225_s9, 4  ;;  %s22_s10 = int_to_ptr.vmem [resolvable:$true] %s21_s10 }
   0x4   :  { %s167_s11 = scalar_lea.vmem %s22_s10, 256  ;;  %p172_p1 = scmp.lt.s32.totalorder %s22_s10, %s22_s10 }
   0x5   :  { %p168_p0 = scmp.ne.s32.totalorder %s22_s10, %s167_s11  ;;  %p173_p2 = scmp.lt.s32.totalorder %s167_s11, %s167_s11 }
   0x7   :  { %p174_p3 = por %p173_p2, %p172_p1 }
   0x9   :  { %p175_p4 = pnand %p174_p3, %p168_p0 }
   0xb   :  { %178 = shalt.err (!%p175_p4)
}
   0xc   :  { %s226_s12 = smov 128   ;;  %s227_s13 = smov 8  }
   0xd   :  { %27 = dma.hbm_to_vmem [thread:$0]  %s254_s0, 256, %s22_s10, [#allocation3], %s226_s12, %s226_s12, %s227_s13  }
   0xe   :  { %s228_s16 = smov [#allocation5]  }
   0xf   :  { %s39_s17 = sshll.u32 %s228_s16, 4  ;;  %s40_s17 = int_to_ptr.vmem [resolvable:$true] %s39_s17 }
  0x10   :  { %s187_s18 = scalar_lea.vmem %s40_s17, 256  ;;  %p192_p6 = scmp.lt.s32.totalorder %s40_s17, %s40_s17 }
  0x11   :  { %p188_p5 = scmp.ne.s32.totalorder %s40_s17, %s187_s18  ;;  %p193_p7 = scmp.lt.s32.totalorder %s187_s18, %s187_s18 }
  0x13   :  { %p194_p8 = por %p193_p7, %p192_p6 }
  0x15   :  { %p195_p9 = pnand %p194_p8, %p188_p5 }
  0x17   :  { %198 = shalt.err (!%p195_p9)
}
  0x18   :  { %45 = dma.hbm_to_vmem [thread:$0]  %s255_s1, 256, %s40_s17, [#allocation6], %s226_s12, %s226_s12, %s227_s13  }
  0x19   :  { %219 = dma.done.wait [#allocation3], 256  }
  0x1a   :  { %220 = vsyncadd [#allocation3], 4294967040 }
  0x1b   :  { %221 = dma.done.wait [#allocation6], 256  }
  0x1c   :  { %222 = vsyncadd [#allocation6], 4294967040  ;;  %v66_v0 = vld [vmem:[#allocation2] sm:$0xff]  ;;  %v67_v1 = vld [vmem:[#allocation2 + $0x8] sm:$0xff]  ;;  %s229_s0 = smov [#allocation7]  }
  0x1d   :  { %v72_v2 = vand.u32 2147483647, %v66_v0  ;;  %v73_v3 = vand.u32 2147483647, %v67_v1  ;;  %v68_v7 = vld [vmem:[#allocation5] sm:$0xff]  ;;  %v69_v9 = vld [vmem:[#allocation5 + $0x8] sm:$0xff] }
  0x1e   :  { %v70_v10 = vmax.f32 %v66_v0, 0.0  ;;  %v82_v11 = vmul.f32 %v68_v7, %v66_v0  ;;  %v71_v12 = vmax.f32 %v67_v1, 0.0  ;;  %v83_v13 = vmul.f32 %v69_v9, %v67_v1  ;;  %s123_s1 = sshll.u32 %s229_s0, 4  ;;  %s124_s1 = int_to_ptr.vmem [resolvable:$true] %s123_s1 }
  0x1f   :  { %v74_v4 = vsub.f32 0.0, %v72_v2  ;;  %v75_v5 = vsub.f32 0.0, %v73_v3  ;;  %v102_v22 = vmul.f32 -0.5, %v68_v7  ;;  %v103_v24 = vmul.f32 -0.5, %v69_v9  ;;  %s199_s21 = scalar_lea.vmem %s124_s1, 128  ;;  %p204_p11 = scmp.lt.s32.totalorder %s124_s1, %s124_s1 }
  0x20   :  { %v92_v14 = vsub.f32 %v82_v11, %v70_v10  ;;  %v93_v15 = vsub.f32 %v83_v13, %v71_v12  ;;  %v84_v26 = vsub.f32 %v70_v10, %v82_v11  ;;  %v85_v28 = vsub.f32 %v71_v12, %v83_v13  ;;  %p200_p10 = scmp.ne.s32.totalorder %s124_s1, %s199_s21  ;;  %p205_p12 = scmp.lt.s32.totalorder %s199_s21, %s199_s21 }
  0x21   :  { %v76_v6 = vmul.f32 1.442695, %v74_v4  ;;  %v78_v8 = vmul.f32 1.442695, %v75_v5  ;;  %v104_v31 = vadd.f32 0.75, %v102_v22  ;;  %v105_v34 = vadd.f32 0.75, %v103_v24 }
  0x22   :  { %v94_v16 = vmul.f32 1.442695, %v92_v14  ;;  %v96_v17 = vmul.f32 1.442695, %v93_v15  ;;  %p206_p13 = por %p205_p12, %p204_p11 }
  0x23   :  { %143 = vpow2.f32 %v76_v6 }
  0x24   :  { %145 = vpow2.f32 %v78_v8  ;;  %p207_p0 = pnand %p206_p13, %p200_p10 }
  0x25   :  { %147 = vpow2.f32 %v94_v16 }
  0x26   :  { %149 = vpow2.f32 %v96_v17 }
  0x30   :  { %v144_v18 = vpop.eup %143 }
  0x31   :  { %v146_v19 = vpop.eup %145  ;;  %v80_v20 = vadd.f32 1.0, %v144_v18 }
  0x32   :  { %v81_v21 = vadd.f32 1.0, %v146_v19  ;;  %v148_v23 = vpop.eup %147 }
  0x33   :  { %151 = vlog2.f32 %v80_v20  ;;  %v150_v25 = vpop.eup %149 }
  0x34   :  { %153 = vlog2.f32 %v81_v21 }
  0x35   :  { %155 = vrcp.f32 %v80_v20 }
  0x36   :  { %157 = vrcp.f32 %v81_v21 }
  0x40   :  { %v152_v27 = vpop.eup %151 }
  0x41   :  { %v154_v29 = vpop.eup %153  ;;  %v87_v30 = vmul.f32 0.6931472, %v152_v27 }
  0x42   :  { %v156_v32 = vpop.eup %155  ;;  %v89_v33 = vmul.f32 0.6931472, %v154_v29 }
  0x43   :  { %v158_v35 = vpop.eup %157  ;;  %v90_v36 = vadd.f32 %v87_v30, %v84_v26  ;;  %v100_v37 = vmul.f32 %v156_v32, %v148_v23 }
  0x44   :  { %v91_v38 = vadd.f32 %v89_v33, %v85_v28  ;;  %v101_v39 = vmul.f32 %v158_v35, %v150_v25 }
  0x45   :  { %v106_v40 = vsub.f32 1.0, %v100_v37  ;;  %v110_v41 = vmul.f32 %v104_v31, %v90_v36 }
  0x46   :  { %v107_v42 = vsub.f32 1.0, %v101_v39  ;;  %v111_v43 = vmul.f32 %v105_v34, %v91_v38 }
  0x47   :  { %v108_v44 = vmul.f32 %v106_v40, %v106_v40 }
  0x48   :  { %v109_v45 = vmul.f32 %v107_v42, %v107_v42 }
  0x49   :  { %v112_v46 = vmul.f32 %v110_v41, %v108_v44 }
  0x4a   :  { %v113_v47 = vmul.f32 %v111_v43, %v109_v45 }
  0x4c   :  { %v114_v48 = vadd.f32 %v113_v47, %v112_v46 }
  0x4e   :  { %116 = vst [vmem:[#allocation7] sm:$0xff] %v114_v48 }
  0x4f   :  { %210 = shalt.err (!%p207_p0)
}
  0x50   :  { %126 = dma.vmem_to_hbm [thread:$0]  %s124_s1, 128, %s256_s2, [#allocation4]  }
  0x51   :  { %223 = dma.done.wait [#allocation4], 128  }
  0x52   :  { %224 = vsyncadd [#allocation4], 4294967168 }
  0x53   :  { %130 = vsyncpa [#allocation3], 1 }
  0x54   :  { %131 = vsyncpa [#allocation6], 1 }
  0x55   :  { %132 = vsyncpa [#allocation4], 1 }

</bundles_post_ra>
